<compile_context>
chip_gen: v6e
topology: v6e:2x2x1
jax: 0.10.0
libtpu: 0.0.40
codegen_flags: <defaults>
</compile_context>

<pallas_src>
import math

import jax
import jax.numpy as jnp
import numpy as np
from jax.experimental import pallas as pl
from jax.experimental.pallas import tpu as pltpu

_LN_EPS = 1e-5                      # PyTorch nn.LayerNorm default

_VMEM_LIMIT_CACHE = None
_BUFFERED1_MODE = None
_BUFFERED1_CHECKED = False


# ------------------------------ helpers ----------------------------------- #

def _vmem_limit_bytes() -> int:
    """Generation-aware VMEM limit (v5e/v6e: ~96 MiB, v7x: ~48 MiB, fallback 32 MiB)."""
    global _VMEM_LIMIT_CACHE
    if _VMEM_LIMIT_CACHE is None:
        try:
            cap = int(pltpu.get_tpu_info().vmem_capacity_bytes)
            _VMEM_LIMIT_CACHE = min(cap * 3 // 4, 100 * 1024 * 1024)
        except Exception:
            _VMEM_LIMIT_CACHE = 32 * 1024 * 1024
    return _VMEM_LIMIT_CACHE


def _buffered_one_mode():
    """pl.Buffered(1) if single-buffering constant operands is supported, else None."""
    global _BUFFERED1_MODE, _BUFFERED1_CHECKED
    if _BUFFERED1_CHECKED:
        return _BUFFERED1_MODE
    _BUFFERED1_CHECKED = True
    try:
        try:
            mode = pl.Buffered(1)
        except TypeError:
            mode = pl.Buffered(buffer_count=1)

        def _probe(x_ref, o_ref):
            o_ref[...] = x_ref[...] + 1.0

        f = pl.pallas_call(
            _probe,
            out_shape=jax.ShapeDtypeStruct((16, 128), jnp.float32),
            grid=(2,),
            in_specs=[pl.BlockSpec((8, 128), lambda i: (0, 0), pipeline_mode=mode)],
            out_specs=pl.BlockSpec((8, 128), lambda i: (i, 0)),
        )
        jax.block_until_ready(f(jnp.zeros((8, 128), jnp.float32)))
        _BUFFERED1_MODE = mode
    except Exception:
        _BUFFERED1_MODE = None
    return _BUFFERED1_MODE


def _const_spec(shape):
    """BlockSpec for a grid-invariant operand: constant index_map, single-buffered."""
    ndim = len(shape)
    idx = lambda i, _n=ndim: (0,) * _n
    mode = _buffered_one_mode()
    if mode is not None:
        return pl.BlockSpec(shape, idx, pipeline_mode=mode)
    return pl.BlockSpec(shape, idx)


def _layer_norm(y, g, b):
    """In-kernel LN: independent reductions (E[y^2] - E[y]^2), EUP rsqrt."""
    mean = jnp.mean(y, axis=-1, keepdims=True)
    var = jnp.mean(y * y, axis=-1, keepdims=True) - mean * mean
    var = jnp.maximum(var, 0.0)
    return (y - mean) * jax.lax.rsqrt(var + _LN_EPS) * g + b


def _layer_norm_ref(y, g, b):
    mean = jnp.mean(y, axis=-1, keepdims=True)
    var = jnp.mean(jnp.square(y - mean), axis=-1, keepdims=True)
    return (y - mean) * jax.lax.rsqrt(var + _LN_EPS) * g + b


def _pick_time_tile(t_out: int, n: int, f: int, k: int, budget_bytes: int) -> int:
    """Byte-budgeted time tile: TT | t_out, (TT*n) % 8 == 0, tile bytes <= budget.

    Prefers >=2 grid steps (megacore sharding on v7x) once tiles are large enough.
    Falls back to the full problem (single step) when no aligned tile exists.
    """
    bytes_per_row = (16 + 2 * k) * f        # body(2buf)+out(2buf) f32 + bf16 taps
    max_rows = max(8, budget_bytes // max(bytes_per_row, 1))
    cands = [t for t in range(1, t_out + 1)
             if t_out % t == 0 and (t * n) % 8 == 0 and t * n <= max_rows]
    if not cands:
        return t_out
    multi = [t for t in cands if t_out // t >= 2]
    if multi and max(multi) * n >= 256:
        return max(multi)
    return max(cands)


# ----------------- fused TDSConv2dBlock + TDSFullyConnectedBlock ---------- #

def _make_pair_kernel(K, N, rows, F, full_body, halo_rows, compute_dtype):
    def kernel(body_ref, x_any, mk_ref, cb_ref, g1_ref, b1_ref,
               w1_ref, fb1_ref, w2_ref, fb2_ref, g2_ref, b2_ref,
               o_ref, halo_ref, sem_ref):
        # -- manual DMA of the (K-1)*N halo rows that follow this body tile --
        dma = None
        if (not full_body) and halo_rows > 0:
            r_halo = pl.multiple_of((pl.program_id(0) + 1) * rows, 8)
            dma = pltpu.make_async_copy(
                x_any.at[pl.ds(r_halo, halo_rows), :], halo_ref, sem_ref.at[0])
            dma.start()

        # -- assemble the K temporal taps (ref-sliced) as a lane-concat operand --
        tap0 = body_ref[0:rows, :]            # tap 0 never needs the halo
        taps = [tap0.astype(compute_dtype)]
        resid = tap0                          # overwritten below unless K == 1
        if dma is not None:
            dma.wait()
        for k in range(1, K):
            nk = k * N
            if full_body:
                tap = body_ref[nk:nk + rows, :]
            elif nk >= rows:
                tap = halo_ref[nk - rows:nk, :]
            else:
                tap = jnp.concatenate(
                    [body_ref[nk:rows, :], halo_ref[0:nk, :]], axis=0)
            if k == K - 1:
                resid = tap                   # f32 residual == inputs[-T_out:]
            taps.append(tap.astype(compute_dtype))
        xcat = taps[0] if K == 1 else jnp.concatenate(taps, axis=-1)  # (rows, K*F)

        # -- temporal conv: one deep matmul + bias + ReLU + residual + LN1 --
        conv = jnp.dot(xcat, mk_ref[...], preferred_element_type=jnp.float32)
        conv = jnp.maximum(conv + cb_ref[...], 0.0)
        y1 = _layer_norm(conv + resid, g1_ref[...], b1_ref[...])

        # -- fused FC block: Linear -> ReLU -> Linear + residual + LN2 --
        h = jnp.dot(y1.astype(compute_dtype), w1_ref[...],
                    preferred_element_type=jnp.float32) + fb1_ref[...]
        h = jnp.maximum(h, 0.0)
        h = jnp.dot(h.astype(compute_dtype), w2_ref[...],
                    preferred_element_type=jnp.float32) + fb2_ref[...]
        y2 = _layer_norm(y1 + h, g2_ref[...], b2_ref[...])
        o_ref[...] = y2.astype(o_ref.dtype)

    return kernel


def _fused_conv_fc_pair(x, T, N, conv_blk, fc_blk, kernel_width,
                        compute_dtype, tile_budget_bytes):
    """x: (T*N, F) lane-dense activations -> ((T_out*N, F), T_out)."""
    F = x.shape[-1]
    K = kernel_width
    T_out = T - K + 1

    # Width-expanded conv weights: mk[k*F + ci*W + wi, co*W + wo] = w[co,ci,0,k] * (wi==wo)
    w, cbias = conv_blk["conv_w"], conv_blk["conv_b"]
    channels = w.shape[0]
    width = F // channels
    eye_w = jnp.eye(width, dtype=jnp.float32)
    mk = jnp.einsum("oik,ab->kiaob", w[:, :, 0, :].astype(jnp.float32), eye_w)
    mk = mk.reshape(K * F, F).astype(compute_dtype)
    cb = jnp.repeat(cbias, width).reshape(1, F).astype(jnp.float32)
    g1 = conv_blk["ln_g"].reshape(1, F)
    b1 = conv_blk["ln_b"].reshape(1, F)
    w1 = fc_blk["w1"].astype(compute_dtype)
    w2 = fc_blk["w2"].astype(compute_dtype)
    fb1 = fc_blk["b1"].reshape(1, F)
    fb2 = fc_blk["b2"].reshape(1, F)
    g2 = fc_blk["ln_g"].reshape(1, F)
    b2 = fc_blk["ln_b"].reshape(1, F)

    TT = _pick_time_tile(T_out, N, F, K, tile_budget_bytes)
    rows = TT * N                         # output rows per grid step
    grid = (T_out // TT,)
    full_body = grid[0] == 1
    body_rows = T * N if full_body else rows
    halo_rows = (K - 1) * N

    kernel = _make_pair_kernel(K, N, rows, F, full_body, halo_rows, compute_dtype)

    in_specs = [
        pl.BlockSpec((body_rows, F), lambda i: (i, 0)),   # activation tile (pipelined)
        pl.BlockSpec(memory_space=pl.ANY),                # same array, HBM ref for halo DMA
        _const_spec((K * F, F)),                          # conv weights (resident)
        _const_spec((1, F)),                              # conv bias
        _const_spec((1, F)), _const_spec((1, F)),         # LN1 gamma / beta
        _const_spec((F, F)), _const_spec((1, F)),         # W1 / b1
        _const_spec((F, F)), _const_spec((1, F)),         # W2 / b2
        _const_spec((1, F)), _const_spec((1, F)),         # LN2 gamma / beta
    ]

    out = pl.pallas_call(
        kernel,
        out_shape=jax.ShapeDtypeStruct((T_out * N, F), jnp.float32),
        grid_spec=pltpu.PrefetchScalarGridSpec(
            num_scalar_prefetch=0,
            grid=grid,
            in_specs=in_specs,
            out_specs=pl.BlockSpec((rows, F), lambda i: (i, 0)),
            scratch_shapes=[
                pltpu.VMEM((max(halo_rows, 1), F), jnp.float32),
                pltpu.SemaphoreType.DMA((1,)),
            ],
        ),
        compiler_params=pltpu.CompilerParams(
            dimension_semantics=("parallel",),
            vmem_limit_bytes=_vmem_limit_bytes(),
        ),
    )(x, x, mk, cb, g1, b1, w1, fb1, w2, fb2, g2, b2)
    return out, T_out


# ------------------------------ encoder ------------------------------------ #

def tds_conv_encoder(x_tnf, blocks, kernel_width: int, *,
                     compute_dtype=jnp.bfloat16, tile_budget_bytes=None):
    """x_tnf: (T, N, num_features) -> (T_out, N, num_features)."""
    T, N, F = x_tnf.shape
    if tile_budget_bytes is None:
        tile_budget_bytes = _vmem_limit_bytes() // 3
    x = x_tnf.reshape(T * N, F).astype(jnp.float32)        # lane-dense (rows, F)
    i = 0
    while i < len(blocks):
        assert (blocks[i]["kind"] == "conv" and i + 1 < len(blocks)
                and blocks[i + 1]["kind"] == "fc"), \
            "TDSConvEncoder alternates TDSConv2dBlock / TDSFullyConnectedBlock"
        x, T = _fused_conv_fc_pair(x, T, N, blocks[i], blocks[i + 1],
                                   kernel_width, compute_dtype, tile_budget_bytes)
        i += 2
    return x.reshape(T, N, F)


# --------------------------- pure-JAX reference ---------------------------- #

def reference(x_tnf, blocks, kernel_width: int):
    """Replicates the PyTorch TDSConvEncoder forward."""
    x = x_tnf.astype(jnp.float32)
    for blk in blocks:
        T, N, F = x.shape
        if blk["kind"] == "conv":
            w, b = blk["conv_w"], blk["conv_b"]
            Co = w.shape[0]
            Ww = F // Co
            K = kernel_width
            T_out = T - K + 1
            x4 = jnp.transpose(x, (1, 2, 0)).reshape(N, Co, Ww, T)
            out4 = jnp.broadcast_to(
                b[None, :, None, None], (N, Co, Ww, T_out)).astype(jnp.float32)
            for k in range(K):
                out4 = out4 + jnp.einsum("niwt,oi->nowt",
                                         x4[..., k:k + T_out], w[:, :, 0, k])
            out4 = jnp.maximum(out4, 0.0)
            y = jnp.transpose(out4.reshape(N, F, T_out), (2, 0, 1))
            y = y + x[K - 1:]
            x = _layer_norm_ref(y, blk["ln_g"], blk["ln_b"])
        else:
            h = jnp.maximum(x @ blk["w1"] + blk["b1"], 0.0)
            h = h @ blk["w2"] + blk["b2"]
            y = x + h
            x = _layer_norm_ref(y, blk["ln_g"], blk["ln_b"])
    return x


# --------------------------------- test ------------------------------------ #

def _make_blocks(key, num_features, block_channels, kernel_width):
    blocks = []
    for channels in block_channels:
        assert num_features % channels == 0
        key, k1, k2, k3, k4 = jax.random.split(key, 5)
        bound = 1.0 / math.sqrt(channels * kernel_width)
        blocks.append(dict(
            kind="conv",
            conv_w=jax.random.uniform(k1, (channels, channels, 1, kernel_width),
                                      jnp.float32, -bound, bound),
            conv_b=jax.random.uniform(k2, (channels,), jnp.float32, -bound, bound),
            ln_g=1.0 + 0.05 * jax.random.normal(k3, (num_features,), jnp.float32),
            ln_b=0.05 * jax.random.normal(k4, (num_features,), jnp.float32),
        ))
        key, k1, k2, k3, k4, k5, k6 = jax.random.split(key, 7)
        bound = 1.0 / math.sqrt(num_features)
        blocks.append(dict(
            kind="fc",
            w1=jax.random.uniform(k1, (num_features, num_features),
                                  jnp.float32, -bound, bound),
            b1=jax.random.uniform(k2, (num_features,), jnp.float32, -bound, bound),
            w2=jax.random.uniform(k3, (num_features, num_features),
                                  jnp.float32, -bound, bound),
            b2=jax.random.uniform(k4, (num_features,), jnp.float32, -bound, bound),
            ln_g=1.0 + 0.05 * jax.random.normal(k5, (num_features,), jnp.float32),
            ln_b=0.05 * jax.random.normal(k6, (num_features,), jnp.float32),
        ))
    return blocks, key


if __name__ == "__main__":
    F = 32
    K = 4
    block_channels = (8, 8)
    key = jax.random.PRNGKey(0)

    # ---- config 1: small — exercises the single-tile (full-window) path ----
    blocks1, key = _make_blocks(key, F, block_channels, K)
    T1, N1 = 16, 2
    key, xk = jax.random.split(key)
    x1 = jax.random.normal(xk, (T1, N1, F), dtype=jnp.float32)
    ref1 = jax.block_until_ready(reference(x1, blocks1, K))
    T1_out = T1 - len(block_channels) * (K - 1)

    out1_f32 = jax.block_until_ready(
        tds_conv_encoder(x1, blocks1, K, compute_dtype=jnp.float32))
    assert out1_f32.shape == (T1_out, N1, F), out1_f32.shape
    np.testing.assert_allclose(np.asarray(out1_f32), np.asarray(ref1),
                               atol=5e-4, rtol=5e-4)

    out1_bf16 = jax.block_until_ready(tds_conv_encoder(x1, blocks1, K))
    np.testing.assert_allclose(np.asarray(out1_bf16), np.asarray(ref1),
                               atol=5e-2, rtol=5e-2)

    # ---- config 2: larger — forces grid>1 (pipelined body + manual halo DMA) ----
    blocks2, key = _make_blocks(key, F, block_channels, K)
    T2, N2 = 35, 8
    key, xk2 = jax.random.split(key)
    x2 = jax.random.normal(xk2, (T2, N2, F), dtype=jnp.float32)
    ref2 = jax.block_until_ready(reference(x2, blocks2, K))
    T2_out = T2 - len(block_channels) * (K - 1)

    out2_f32 = jax.block_until_ready(
        tds_conv_encoder(x2, blocks2, K, compute_dtype=jnp.float32,
                         tile_budget_bytes=64 * 1024))
    assert out2_f32.shape == (T2_out, N2, F), out2_f32.shape
    np.testing.assert_allclose(np.asarray(out2_f32), np.asarray(ref2),
                               atol=5e-4, rtol=5e-4)

    out2_bf16 = jax.block_until_ready(
        tds_conv_encoder(x2, blocks2, K, tile_budget_bytes=64 * 1024))
    np.testing.assert_allclose(np.asarray(out2_bf16), np.asarray(ref2),
                               atol=5e-2, rtol=5e-2)

    print("KERNEL_OK")
</pallas_src>

<mosaic_0001>
module attributes {stable_mosaic.version = 11 : i64} {
  func.func @_probe(%arg0: i32, %arg1: memref<8x128xf32, #tpu.memory_space<vmem>>, %arg2: memref<8x128xf32, #tpu.memory_space<vmem>>) attributes {dimension_semantics = [#tpu.dimension_semantics<arbitrary>], iteration_bounds = array<i64: 2>, scalar_prefetch = 0 : i64, scratch_operands = 0 : i64, tpu.core_type = #tpu.core_type<tc>, window_params = [{pipeline_mode = #tpu.pipeline_mode<synchronous>, transform_indices = @transform_0, window_bounds = array<i64: 8, 128>}, {transform_indices = @transform_1, window_bounds = array<i64: 8, 128>}]} {
    %c0 = arith.constant 0 : index
    %c0_0 = arith.constant 0 : index
    %0 = vector.load %arg1[%c0, %c0_0] : memref<8x128xf32, #tpu.memory_space<vmem>>, vector<8x128xf32>
    %cst = arith.constant 1.000000e+00 : f32
    %1 = vector.broadcast %cst : f32 to vector<8x128xf32>
    %2 = arith.addf %0, %1 : vector<8x128xf32>
    %c0_1 = arith.constant 0 : index
    %c0_2 = arith.constant 0 : index
    %3 = vector.load %arg2[%c0_1, %c0_2] : memref<8x128xf32, #tpu.memory_space<vmem>>, vector<8x128xf32>
    tpu.vector_store %arg2[%c0_1, %c0_2], %2 {strides = array<i32>} : memref<8x128xf32, #tpu.memory_space<vmem>>, vector<8x128xf32>,
    return
  }
  func.func @transform_0(%arg0: i32) -> (i32, i32) {
    %c0_i32 = arith.constant 0 : i32
    %c0_i32_0 = arith.constant 0 : i32
    %c0_i32_1 = arith.constant 0 : i32
    return %c0_i32, %c0_i32_0 : i32, i32
  }
  func.func @transform_1(%arg0: i32) -> (i32, i32) {
    %c0_i32 = arith.constant 0 : i32
    %c0_i32_0 = arith.constant 0 : i32
    return %arg0, %c0_i32 : i32, i32
  }
}

module attributes {stable_mosaic.version = 11 : i64} {
  func.func @kernel(%arg0: i32, %arg1: memref<32x32xf32, #tpu.memory_space<vmem>>, %arg2: memref<32x32xf32, #tpu.memory_space<any>>, %arg3: memref<128x32xf32, #tpu.memory_space<vmem>>, %arg4: memref<1x32xf32, #tpu.memory_space<vmem>>, %arg5: memref<1x32xf32, #tpu.memory_space<vmem>>, %arg6: memref<1x32xf32, #tpu.memory_space<vmem>>, %arg7: memref<32x32xf32, #tpu.memory_space<vmem>>, %arg8: memref<1x32xf32, #tpu.memory_space<vmem>>, %arg9: memref<32x32xf32, #tpu.memory_space<vmem>>, %arg10: memref<1x32xf32, #tpu.memory_space<vmem>>, %arg11: memref<1x32xf32, #tpu.memory_space<vmem>>, %arg12: memref<1x32xf32, #tpu.memory_space<vmem>>, %arg13: memref<26x32xf32, #tpu.memory_space<vmem>>, %arg14: memref<6x32xf32, #tpu.memory_space<vmem>>, %arg15: memref<1x!tpu.dma_semaphore, #tpu.memory_space<semaphore_mem>>) attributes {dimension_semantics = [#tpu.dimension_semantics<parallel>], iteration_bounds = array<i64: 1>, scalar_prefetch = 0 : i64, scratch_operands = 2 : i64, tpu.core_type = #tpu.core_type<tc>, window_params = [{transform_indices = @transform_0, window_bounds = array<i64: 32, 32>}, {}, {pipeline_mode = #tpu.pipeline_mode<synchronous>, transform_indices = @transform_2, window_bounds = array<i64: 128, 32>}, {pipeline_mode = #tpu.pipeline_mode<synchronous>, transform_indices = @transform_3, window_bounds = array<i64: 1, 32>}, {pipeline_mode = #tpu.pipeline_mode<synchronous>, transform_indices = @transform_4, window_bounds = array<i64: 1, 32>}, {pipeline_mode = #tpu.pipeline_mode<synchronous>, transform_indices = @transform_5, window_bounds = array<i64: 1, 32>}, {pipeline_mode = #tpu.pipeline_mode<synchronous>, transform_indices = @transform_6, window_bounds = array<i64: 32, 32>}, {pipeline_mode = #tpu.pipeline_mode<synchronous>, transform_indices = @transform_7, window_bounds = array<i64: 1, 32>}, {pipeline_mode = #tpu.pipeline_mode<synchronous>, transform_indices = @transform_8, window_bounds = array<i64: 32, 32>}, {pipeline_mode = #tpu.pipeline_mode<synchronous>, transform_indices = @transform_9, window_bounds = array<i64: 1, 32>}, {pipeline_mode = #tpu.pipeline_mode<synchronous>, transform_indices = @transform_10, window_bounds = array<i64: 1, 32>}, {pipeline_mode = #tpu.pipeline_mode<synchronous>, transform_indices = @transform_11, window_bounds = array<i64: 1, 32>}, {transform_indices = @transform_12, window_bounds = array<i64: 26, 32>}]} {
    %c0 = arith.constant 0 : index
    %c0_0 = arith.constant 0 : index
    %0 = vector.load %arg1[%c0, %c0_0] : memref<32x32xf32, #tpu.memory_space<vmem>>, vector<26x32xf32>
    %c2 = arith.constant 2 : index
    %c0_1 = arith.constant 0 : index
    %1 = vector.load %arg1[%c2, %c0_1] : memref<32x32xf32, #tpu.memory_space<vmem>>, vector<26x32xf32>
    %c4 = arith.constant 4 : index
    %c0_2 = arith.constant 0 : index
    %2 = vector.load %arg1[%c4, %c0_2] : memref<32x32xf32, #tpu.memory_space<vmem>>, vector<26x32xf32>
    %c6 = arith.constant 6 : index
    %c0_3 = arith.constant 0 : index
    %3 = vector.load %arg1[%c6, %c0_3] : memref<32x32xf32, #tpu.memory_space<vmem>>, vector<26x32xf32>
    %4 = tpu.concatenate %0, %1, %2, %3 in 1 : vector<26x32xf32>, vector<26x32xf32>, vector<26x32xf32>, vector<26x32xf32> -> vector<26x128xf32>
    %c0_4 = arith.constant 0 : index
    %c0_5 = arith.constant 0 : index
    %5 = vector.load %arg3[%c0_4, %c0_5] : memref<128x32xf32, #tpu.memory_space<vmem>>, vector<128x32xf32>
    %cst = arith.constant dense<0.000000e+00> : vector<26x32xf32>
    %6 = tpu.matmul %4, %5, %cst {dimension_numbers = #tpu.dot_dimension_numbers<[1], [0], [0], [1], [0, 0, 1, 1], [], []>} : vector<26x128xf32>, vector<128x32xf32>, vector<26x32xf32> -> vector<26x32xf32>
    %c0_6 = arith.constant 0 : index
    %c0_7 = arith.constant 0 : index
    %7 = vector.load %arg4[%c0_6, %c0_7] : memref<1x32xf32, #tpu.memory_space<vmem>>, vector<1x32xf32>
    %8 = vector.broadcast %7 : vector<1x32xf32> to vector<26x32xf32>
    %9 = arith.addf %6, %8 : vector<26x32xf32>
    %cst_8 = arith.constant 0.000000e+00 : f32
    %10 = vector.broadcast %cst_8 : f32 to vector<26x32xf32>
    %11 = arith.maximumf %9, %10 : vector<26x32xf32>
    %12 = arith.addf %11, %3 : vector<26x32xf32>
    %c0_9 = arith.constant 0 : index
    %c0_10 = arith.constant 0 : index
    %13 = vector.load %arg5[%c0_9, %c0_10] : memref<1x32xf32, #tpu.memory_space<vmem>>, vector<1x32xf32>
    %c0_11 = arith.constant 0 : index
    %c0_12 = arith.constant 0 : index
    %14 = vector.load %arg6[%c0_11, %c0_12] : memref<1x32xf32, #tpu.memory_space<vmem>>, vector<1x32xf32>
    %cst_13 = arith.constant dense<0.000000e+00> : vector<26xf32>
    %15 = vector.multi_reduction <add>, %12, %cst_13 [1] : vector<26x32xf32> to vector<26xf32>
    %16 = vector.shape_cast %15 : vector<26xf32> to vector<26x1xf32>
    %cst_14 = arith.constant 3.200000e+01 : f32
    %17 = vector.broadcast %cst_14 : f32 to vector<26x1xf32>
    %18 = arith.divf %16, %17 : vector<26x1xf32>
    %19 = arith.mulf %12, %12 : vector<26x32xf32>
    %cst_15 = arith.constant dense<0.000000e+00> : vector<26xf32>
    %20 = vector.multi_reduction <add>, %19, %cst_15 [1] : vector<26x32xf32> to vector<26xf32>
    %21 = vector.shape_cast %20 : vector<26xf32> to vector<26x1xf32>
    %cst_16 = arith.constant 3.200000e+01 : f32
    %22 = vector.broadcast %cst_16 : f32 to vector<26x1xf32>
    %23 = arith.divf %21, %22 : vector<26x1xf32>
    %24 = arith.mulf %18, %18 : vector<26x1xf32>
    %25 = arith.subf %23, %24 : vector<26x1xf32>
    %cst_17 = arith.constant 0.000000e+00 : f32
    %26 = vector.broadcast %cst_17 : f32 to vector<26x1xf32>
    %27 = arith.maximumf %25, %26 : vector<26x1xf32>
    %28 = vector.broadcast %18 : vector<26x1xf32> to vector<26x32xf32>
    %29 = arith.subf %12, %28 : vector<26x32xf32>
    %cst_18 = arith.constant 9.99999974E-6 : f32
    %30 = vector.broadcast %cst_18 : f32 to vector<26x1xf32>
    %31 = arith.addf %27, %30 : vector<26x1xf32>
    %32 = math.rsqrt %31 : vector<26x1xf32>
    %33 = vector.broadcast %32 : vector<26x1xf32> to vector<26x32xf32>
    %34 = arith.mulf %29, %33 : vector<26x32xf32>
    %35 = vector.broadcast %13 : vector<1x32xf32> to vector<26x32xf32>
    %36 = arith.mulf %34, %35 : vector<26x32xf32>
    %37 = vector.broadcast %14 : vector<1x32xf32> to vector<26x32xf32>
    %38 = arith.addf %36, %37 : vector<26x32xf32>
    %c0_19 = arith.constant 0 : index
    %c0_20 = arith.constant 0 : index
    %39 = vector.load %arg7[%c0_19, %c0_20] : memref<32x32xf32, #tpu.memory_space<vmem>>, vector<32x32xf32>
    %cst_21 = arith.constant dense<0.000000e+00> : vector<26x32xf32>
    %40 = tpu.matmul %38, %39, %cst_21 {dimension_numbers = #tpu.dot_dimension_numbers<[1], [0], [0], [1], [0, 0, 1, 1], [], []>} : vector<26x32xf32>, vector<32x32xf32>, vector<26x32xf32> -> vector<26x32xf32>
    %c0_22 = arith.constant 0 : index
    %c0_23 = arith.constant 0 : index
    %41 = vector.load %arg8[%c0_22, %c0_23] : memref<1x32xf32, #tpu.memory_space<vmem>>, vector<1x32xf32>
    %42 = vector.broadcast %41 : vector<1x32xf32> to vector<26x32xf32>
    %43 = arith.addf %40, %42 : vector<26x32xf32>
    %cst_24 = arith.constant 0.000000e+00 : f32
    %44 = vector.broadcast %cst_24 : f32 to vector<26x32xf32>
    %45 = arith.maximumf %43, %44 : vector<26x32xf32>
    %c0_25 = arith.constant 0 : index
    %c0_26 = arith.constant 0 : index
    %46 = vector.load %arg9[%c0_25, %c0_26] : memref<32x32xf32, #tpu.memory_space<vmem>>, vector<32x32xf32>
    %cst_27 = arith.constant dense<0.000000e+00> : vector<26x32xf32>
    %47 = tpu.matmul %45, %46, %cst_27 {dimension_numbers = #tpu.dot_dimension_numbers<[1], [0], [0], [1], [0, 0, 1, 1], [], []>} : vector<26x32xf32>, vector<32x32xf32>, vector<26x32xf32> -> vector<26x32xf32>
    %c0_28 = arith.constant 0 : index
    %c0_29 = arith.constant 0 : index
    %48 = vector.load %arg10[%c0_28, %c0_29] : memref<1x32xf32, #tpu.memory_space<vmem>>, vector<1x32xf32>
    %49 = vector.broadcast %48 : vector<1x32xf32> to vector<26x32xf32>
    %50 = arith.addf %47, %49 : vector<26x32xf32>
    %51 = arith.addf %38, %50 : vector<26x32xf32>
    %c0_30 = arith.constant 0 : index
    %c0_31 = arith.constant 0 : index
    %52 = vector.load %arg11[%c0_30, %c0_31] : memref<1x32xf32, #tpu.memory_space<vmem>>, vector<1x32xf32>
    %c0_32 = arith.constant 0 : index
    %c0_33 = arith.constant 0 : index
    %53 = vector.load %arg12[%c0_32, %c0_33] : memref<1x32xf32, #tpu.memory_space<vmem>>, vector<1x32xf32>
    %cst_34 = arith.constant dense<0.000000e+00> : vector<26xf32>
    %54 = vector.multi_reduction <add>, %51, %cst_34 [1] : vector<26x32xf32> to vector<26xf32>
    %55 = vector.shape_cast %54 : vector<26xf32> to vector<26x1xf32>
    %cst_35 = arith.constant 3.200000e+01 : f32
    %56 = vector.broadcast %cst_35 : f32 to vector<26x1xf32>
    %57 = arith.divf %55, %56 : vector<26x1xf32>
    %58 = arith.mulf %51, %51 : vector<26x32xf32>
    %cst_36 = arith.constant dense<0.000000e+00> : vector<26xf32>
    %59 = vector.multi_reduction <add>, %58, %cst_36 [1] : vector<26x32xf32> to vector<26xf32>
    %60 = vector.shape_cast %59 : vector<26xf32> to vector<26x1xf32>
    %cst_37 = arith.constant 3.200000e+01 : f32
    %61 = vector.broadcast %cst_37 : f32 to vector<26x1xf32>
    %62 = arith.divf %60, %61 : vector<26x1xf32>
    %63 = arith.mulf %57, %57 : vector<26x1xf32>
    %64 = arith.subf %62, %63 : vector<26x1xf32>
    %cst_38 = arith.constant 0.000000e+00 : f32
    %65 = vector.broadcast %cst_38 : f32 to vector<26x1xf32>
    %66 = arith.maximumf %64, %65 : vector<26x1xf32>
    %67 = vector.broadcast %57 : vector<26x1xf32> to vector<26x32xf32>
    %68 = arith.subf %51, %67 : vector<26x32xf32>
    %cst_39 = arith.constant 9.99999974E-6 : f32
    %69 = vector.broadcast %cst_39 : f32 to vector<26x1xf32>
    %70 = arith.addf %66, %69 : vector<26x1xf32>
    %71 = math.rsqrt %70 : vector<26x1xf32>
    %72 = vector.broadcast %71 : vector<26x1xf32> to vector<26x32xf32>
    %73 = arith.mulf %68, %72 : vector<26x32xf32>
    %74 = vector.broadcast %52 : vector<1x32xf32> to vector<26x32xf32>
    %75 = arith.mulf %73, %74 : vector<26x32xf32>
    %76 = vector.broadcast %53 : vector<1x32xf32> to vector<26x32xf32>
    %77 = arith.addf %75, %76 : vector<26x32xf32>
    %c0_40 = arith.constant 0 : index
    %c0_41 = arith.constant 0 : index
    %78 = vector.load %arg13[%c0_40, %c0_41] : memref<26x32xf32, #tpu.memory_space<vmem>>, vector<26x32xf32>
    tpu.vector_store %arg13[%c0_40, %c0_41], %77 {strides = array<i32>} : memref<26x32xf32, #tpu.memory_space<vmem>>, vector<26x32xf32>,
    return
  }
  func.func @transform_0(%arg0: i32) -> (i32, i32) {
    %c0_i32 = arith.constant 0 : i32
    %c0_i32_0 = arith.constant 0 : i32
    return %arg0, %c0_i32 : i32, i32
  }
  func.func @transform_2(%arg0: i32) -> (i32, i32) {
    %c0_i32 = arith.constant 0 : i32
    %c0_i32_0 = arith.constant 0 : i32
    %c0_i32_1 = arith.constant 0 : i32
    return %c0_i32, %c0_i32_0 : i32, i32
  }
  func.func @transform_3(%arg0: i32) -> (i32, i32) {
    %c0_i32 = arith.constant 0 : i32
    %c0_i32_0 = arith.constant 0 : i32
    %c0_i32_1 = arith.constant 0 : i32
    return %c0_i32, %c0_i32_0 : i32, i32
  }
  func.func @transform_4(%arg0: i32) -> (i32, i32) {
    %c0_i32 = arith.constant 0 : i32
    %c0_i32_0 = arith.constant 0 : i32
    %c0_i32_1 = arith.constant 0 : i32
    return %c0_i32, %c0_i32_0 : i32, i32
  }
  func.func @transform_5(%arg0: i32) -> (i32, i32) {
    %c0_i32 = arith.constant 0 : i32
    %c0_i32_0 = arith.constant 0 : i32
    %c0_i32_1 = arith.constant 0 : i32
    return %c0_i32, %c0_i32_0 : i32, i32
  }
  func.func @transform_6(%arg0: i32) -> (i32, i32) {
    %c0_i32 = arith.constant 0 : i32
    %c0_i32_0 = arith.constant 0 : i32
    %c0_i32_1 = arith.constant 0 : i32
    return %c0_i32, %c0_i32_0 : i32, i32
  }
  func.func @transform_7(%arg0: i32) -> (i32, i32) {
    %c0_i32 = arith.constant 0 : i32
    %c0_i32_0 = arith.constant 0 : i32
    %c0_i32_1 = arith.constant 0 : i32
    return %c0_i32, %c0_i32_0 : i32, i32
  }
  func.func @transform_8(%arg0: i32) -> (i32, i32) {
    %c0_i32 = arith.constant 0 : i32
    %c0_i32_0 = arith.constant 0 : i32
    %c0_i32_1 = arith.constant 0 : i32
    return %c0_i32, %c0_i32_0 : i32, i32
  }
  func.func @transform_9(%arg0: i32) -> (i32, i32) {
    %c0_i32 = arith.constant 0 : i32
    %c0_i32_0 = arith.constant 0 : i32
    %c0_i32_1 = arith.constant 0 : i32
    return %c0_i32, %c0_i32_0 : i32, i32
  }
  func.func @transform_10(%arg0: i32) -> (i32, i32) {
    %c0_i32 = arith.constant 0 : i32
    %c0_i32_0 = arith.constant 0 : i32
    %c0_i32_1 = arith.constant 0 : i32
    return %c0_i32, %c0_i32_0 : i32, i32
  }
  func.func @transform_11(%arg0: i32) -> (i32, i32) {
    %c0_i32 = arith.constant 0 : i32
    %c0_i32_0 = arith.constant 0 : i32
    %c0_i32_1 = arith.constant 0 : i32
    return %c0_i32, %c0_i32_0 : i32, i32
  }
  func.func @transform_12(%arg0: i32) -> (i32, i32) {
    %c0_i32 = arith.constant 0 : i32
    %c0_i32_0 = arith.constant 0 : i32
    return %arg0, %c0_i32 : i32, i32
  }
}

</mosaic_0001>

<bundles_post_ra>
// kernel: tpu_custom_call.1
= control target key start
LH: loop header
LB: loop body
LE: loop exit
PB: predicated region body
PF: predicated region fallthrough
CT: control target
= control target key end

     0   :  { %6 = vsyncpa [#allocation3], 0  ;;  %s448_s0 = inlined_call_operand.hbm [shape: f32[8,128], index: 0, kind: input, shape index: {}]   ;;  %s449_s1 = inlined_call_operand.hbm [shape: f32[16,128], index: 1, kind: output, shape index: {}]  }
   0x1   :  { %7 = vsyncpa [#allocation4], 0 }
   0x2   :  { %9 = vsyncpa [#allocation4 + $0x1], 0  ;;  %s348_s6 = smov 0   ;;  %s350_s7 = smov 0  }
   0x3   :  { %s352_s8 = smov 0   ;;  %s354_s9 = smov 0  }
   0x4 LB: > { %s369_s10 = sadd.s32 4294967295, %s334_s9   ;;  %s184_s11 = sadd.s32 4294967294, %s334_s9   ;;  %s334_s9 = sphi %s354_s9, %s457_s9   ;;  %s330_s8 = sphi %s352_s8, %s456_s8   ;;  %s326_s7 = sphi %s350_s7, %s455_s7   ;;  %s322_s6 = sphi %s348_s6, %s454_s6  }
   0x5   : > { %s373_s12 = sadd.s32 1, %s334_s9   ;;  %s43_s13 = sadd.s32 1, %s330_s8 }
   0x6   : > { %s40_s14 = ssub.s32 %s334_s9, %s373_s12  ;;  %p53_p0 = scmp.ne.s32.totalorder %s330_s8, %s326_s7 }
   0x7   : > { %p41_p1 = scmp.eq.s32.totalorder %s40_s14, 0  ;;  %p54_p2 = scmp.eq.s32.totalorder %s369_s10, 1 }
   0x8   : > { %p59_p3 = scmp.ne.s32.totalorder %s326_s7, %s322_s6  ;;  %p60_p4 = scmp.eq.s32.totalorder %s184_s11, 1 }
   0x9   : > { %s384_s15 = scalar_select %p41_p1, %s330_s8, %s43_s13  }
   0xa   : > { %p386_p5 = por %p54_p2, %p53_p0  ;;  %p390_p6 = por %p60_p4, %p59_p3 }
   0xb   : > { %p185_p7 = scmp.ge.s32.totalorder %s334_s9, 1  ;;  %p67_p8 = scmp.lt.s32.totalorder %s334_s9, 3 }
   0xc   : > { %s451_s17 = scalar_select %p390_p6, 1, 0 }
   0xd   : > { %p208_p9 = scmp.eq.s32.totalorder %s369_s10, 0  ;;  %p397_p10 = pnand %p185_p7, %p67_p8 }
   0xe   : > { %s336_s19 = smov [#allocation2]  }
   0xf   : > { %s80_s20 = sshll.u32 %s336_s19, 4  ;;  %p200_p11 = pneg %p397_p10  ;;  %s81_s20 = int_to_ptr.vmem [resolvable:$true] %s80_s20 }
  0x10   : > { %s255_s21 = scalar_lea.vmem %s81_s20, 128  ;;  %p263_p3 = scmp.lt.s32.totalorder %s81_s20, %s81_s20 }
  0x11   : > { %p201_p12 = pnand %p208_p9, %p200_p11  ;;  %p256_p0 = scmp.ne.s32.totalorder %s81_s20, %s255_s21 }
  0x12   : > { %p264_p4 = scmp.lt.s32.totalorder %s255_s21, %s255_s21 }
  0x13   : > { %p246_p13 = pneg %p201_p12 }
  0x14   : > { %p265_p6 = por %p264_p4, %p263_p3 }
  0x15   : > { %p258_p1 = pnand %p256_p0, %p246_p13 }
  0x17   : > { %p259_p2 = pneg %p258_p1 }
  0x19   : > { %p266_p7 = pnand %p265_p6, %p259_p2 }
  0x1b   : > { %269 = shalt.err (!%p266_p7)
}
  0x1c   : > { %203 = dma.hbm_to_vmem [thread:$0]  (!%p201_p12), %s448_s0, 128, %s81_s20, [#allocation3]  }
  0x1d   : > { %93 = sbr.rel (%p397_p10) target bundleno = 60 (0x3c), region = 24 }
  0x22   : > { %313 = dma.done.wait (%p208_p9), [#allocation3], 128  }
  0x23   : > { %315 = vsyncadd (%p208_p9), [#allocation3], 4294967168  ;;  %s105_s24 = sand.u32 1, %s326_s7   ;;  %s191_s28 = sshll.u32 %s369_s10, 7  ;;  %v108_v0 = vld [vmem:[#allocation2] sm:$0xff] }
  0x24   : > { %s189_s25 = sshll.u32 %s105_s24, 3  ;;  %v109_v1 = vadd.f32 1.0, %v108_v0  ;;  %s123_s2 = scalar_lea.hbm %s449_s1, %s191_s28 }
  0x25   : > { %s107_s26 = scalar_lea.vmem [#allocation5], %s189_s25  ;;  %s112_s3 = scalar_lea.sflag [#allocation4], %s105_s24 }
  0x26   : > { %s125_s27 = sshll.u32 %s107_s26, 4  ;;  %110 = vst [vmem:[%s107_s26] sm:$0xff] %v109_v1  ;;  %s337_s5 = smov [#allocation5]   ;;  %s126_s27 = int_to_ptr.vmem [resolvable:$true] %s125_s27 }
  0x27   : > { %s270_s4 = scalar_lea.vmem %s126_s27, 128  ;;  %s274_s11 = sshll.u32 %s337_s5, 4  ;;  %s275_s11 = int_to_ptr.vmem [resolvable:$false] %s274_s11 }
  0x28   : > { %p271_p6 = scmp.ne.s32.totalorder %s126_s27, %s270_s4  ;;  %s276_s13 = scalar_lea.vmem %s275_s11, 256 }
  0x29   : > { %p277_p10 = scmp.lt.s32.totalorder %s126_s27, %s275_s11  ;;  %p278_p11 = scmp.lt.s32.totalorder %s276_s13, %s270_s4 }
  0x2a   : > { %p272_p8 = pnand %p271_p6, %p386_p5 }
  0x2b   : > { %p279_p12 = por %p278_p11, %p277_p10 }
  0x2c   : > { %p273_p9 = pneg %p272_p8 }
  0x2e   : > { %p280_p13 = pnand %p279_p12, %p273_p9 }
  0x30   : > { %283 = shalt.err (!%p280_p13)
}
  0x31   : > { %s284_s10 = scalar_lea.hbm %s123_s2, 128  ;;  %s288_s19 = scalar_lea.hbm %s449_s1, 256 }
  0x32   : > { %p285_p0 = scmp.ne.s32.totalorder %s123_s2, %s284_s10  ;;  %p289_p3 = scmp.lt.s32.totalorder %s123_s2, %s449_s1 }
  0x33   : > { %p290_p4 = scmp.lt.s32.totalorder %s288_s19, %s284_s10 }
  0x34   : > { %p286_p1 = pnand %p285_p0, %p386_p5 }
  0x35   : > { %p291_p7 = por %p290_p4, %p289_p3 }
  0x36   : > { %p287_p2 = pneg %p286_p1 }
  0x38   : > { %p292_p6 = pnand %p291_p7, %p287_p2 }
  0x3a   : > { %295 = shalt.err (!%p292_p6)
}
  0x3b   : > { %198 = dma.vmem_to_hbm [thread:$0]  (%p386_p5), %s126_s27, 128, %s123_s2, %s112_s3  }
  0x3c PF: > { %p210_p8 = scmp.ge.s32.totalorder %s334_s9, 2  ;;  %s137_s22 = sand.u32 1, %s322_s6  }
  0x3d   : > { %p453_p9 = scmp.ne.s32.totalorder %s451_s17, 0  ;;  %s138_s23 = scalar_lea.sflag [#allocation4], %s137_s22 }
  0x3f   : > { %p205_p10 = pnand %p210_p8, %p453_p9 }
  0x41   : > { %p206_p11 = pneg %p205_p10 }
  0x43   : > { %317 = dma.done.wait (%p206_p11), %s138_s23, 128  }
  0x44   : > { %319 = vsyncadd (%p206_p11), %s138_s23, 4294967168  ;;  %p12_p12 = scmp.ge.s32.totalorder %s373_s12, 4   ;;  %s454_s6 = smov %s326_s7 }
  0x45   : > { %s455_s7 = smov %s330_s8  ;;  %s456_s8 = smov %s384_s15 }
  0x46   : > { %s457_s9 = smov %s373_s12  ;;  %14 = sbr.rel (!%p12_p12) target bundleno = 4 (0x4), region = 61 }
  0x4b   :  { %143 = vsyncpa [#allocation3], 1 }
  0x4c   :  { %145 = vsyncpa [#allocation3 + $0x1], 1 }
  0x4d   :  { %146 = vsyncpa [#allocation4], 1 }
  0x4e   :  { %148 = vsyncpa [#allocation4 + $0x1], 1 }

// kernel: tpu_custom_call.1
= control target key start
LH: loop header
LB: loop body
LE: loop exit
PB: predicated region body
PF: predicated region fallthrough
CT: control target
= control target key end

     0   :  { %s851_s17 = smov 32   ;;  %s852_s20 = smov 96   ;;  %s1170_s0 = inlined_call_operand.vmem [shape: f32[32,32], index: 0, kind: input, shape index: {}]   ;;  %s1171_s1 = inlined_call_operand.vmem [shape: f32[32,32], index: 1, kind: input, shape index: {}]   ;;  %s1172_s2 = inlined_call_operand.vmem [shape: f32[128,32], index: 2, kind: input, shape index: {}]   ;;  %s1173_s3 = inlined_call_operand.vmem [shape: f32[1,32], index: 3, kind: input, shape index: {}]   ;;  %s1174_s4 = inlined_call_operand.vmem [shape: f32[1,32], index: 4, kind: input, shape index: {}]   ;;  %s1175_s5 = inlined_call_operand.vmem [shape: f32[1,32], index: 5, kind: input, shape index: {}]   ;;  %s1176_s6 = inlined_call_operand.vmem [shape: f32[32,32], index: 6, kind: input, shape index: {}]   ;;  %s1177_s7 = inlined_call_operand.vmem [shape: f32[1,32], index: 7, kind: input, shape index: {}]   ;;  %s1178_s8 = inlined_call_operand.vmem [shape: f32[32,32], index: 8, kind: input, shape index: {}]   ;;  %s1179_s9 = inlined_call_operand.vmem [shape: f32[1,32], index: 9, kind: input, shape index: {}]   ;;  %s1180_s10 = inlined_call_operand.vmem [shape: f32[1,32], index: 10, kind: input, shape index: {}]   ;;  %s1181_s11 = inlined_call_operand.vmem [shape: f32[1,32], index: 11, kind: input, shape index: {}]   ;;  %s1182_s12 = inlined_call_operand.hbm [shape: f32[26,32], index: 12, kind: output, shape index: {}]  }
   0x1   :  { %v44_v0 = vld [vmem:[%s1170_s0 + $0x2] sm:$0xff]  ;;  %v45_v1 = vld [vmem:[%s1170_s0 + $0xa] sm:$0xff]  ;;  %v46_v8 = vld [vmem:[%s1170_s0 + $0x12] sm:$0xff]  ;;  %s853_s14 = smov 64  }
   0x2   :  { %v931_v2 = vld [vmem:[%s1170_s0 + $0x6] sm:$0xff]  ;;  %v783_v3 = vpack.i.bf16 %v45_v1, %v44_v0  ;;  %v936_v4 = vld [vmem:[%s1170_s0 + $0xe] sm:$0xff]  ;;  %v47_v9 = vld [vmem:[%s1170_s0 + $0x1a] sm:$0x3] }
   0x3   :  { %v48_v5 = vld [vmem:[%s1170_s0 + $0x4] sm:$0xff]  ;;  %v49_v6 = vld [vmem:[%s1170_s0 + $0xc] sm:$0xff]  ;;  %v793_v7 = vpack.i.bf16 %v936_v4, %v931_v2  ;;  %v50_v11 = vld [vmem:[%s1170_s0 + $0x14] sm:$0xff]  ;;  %v798_v12 = vpack.i.bf16 %v47_v9, %v46_v8 }
   0x4   :  { %784 = vrot.lane.b32.xlu0 %v783_v3, %s851_s17  ;;  %v788_v10 = vpack.i.bf16 %v49_v6, %v48_v5  ;;  %v51_v13 = vld [vmem:[%s1170_s0 + $0x1c] sm:$0x3]  ;;  %v133_v15 = vld [vmem:[%s1172_s2 + $0x70] sm:$0xff]  ;;  %v972_v17 = vld [vmem:[%s1170_s0 + $0x1e] sm:$0x3] }
   0x5   :  { %794 = vrot.lane.b32.xlu1 %v793_v7, %s852_s20  ;;  %v134_v14 = vld [vmem:[%s1172_s2 + $0x78] sm:$0xff]  ;;  %v132_v18 = vld [vmem:[%s1172_s2 + $0x68] sm:$0xff]  ;;  %v803_v19 = vpack.i.bf16 %v51_v13, %v50_v11  ;;  %v131_v21 = vld [vmem:[%s1172_s2 + $0x60] sm:$0xff] }
   0x6   :  { %v967_v16 = vld [vmem:[%s1170_s0 + $0x16] sm:$0xff]  ;;  %711 = vmatprep.subr.mxu0 %v134_v14 }
   0x7   :  { %712 = vmatpush3.msra.mxu0 %v134_v14  ;;  %v808_v20 = vpack.i.bf16 %v972_v17, %v967_v16  ;;  %v130_v22 = vld [vmem:[%s1172_s2 + $0x58] sm:$0xff] }
   0x8   :  { %789 = vrot.lane.b32.xlu0 %v788_v10, %s853_s14  ;;  %713 = vmatprep.subr.mxu0 %v133_v15 }
   0x9   :  { %799 = vrot.lane.b32.xlu1 %v798_v12, %s851_s17  ;;  %714 = vmatpush3.msra.mxu0 %v133_v15 }
   0xa   :  { %715 = vmatprep.subr.mxu0 %v132_v18 }
   0xb   :  { %716 = vmatpush3.msra.mxu0 %v132_v18 }
   0xc   :  { %17 = vsyncpa [#allocation5], 0  ;;  %804 = vrot.lane.b32.xlu0 %v803_v19, %s853_s14  ;;  %717 = vmatprep.subr.mxu0 %v131_v21  ;;  %v129_v23 = vld [vmem:[%s1172_s2 + $0x50] sm:$0xff]  ;;  %v128_v24 = vld [vmem:[%s1172_s2 + $0x48] sm:$0xff]  ;;  %vm104_vm0 = vcmask 261120   ;;  %vm109_vm1 = vcmask 523264  }
   0xd   :  { %809 = vrot.lane.b32.xlu1 %v808_v20, %s852_s20  ;;  %718 = vmatpush3.msra.mxu0 %v131_v21  ;;  %v127_v25 = vld [vmem:[%s1172_s2 + $0x40] sm:$0xff]  ;;  %v126_v26 = vld [vmem:[%s1172_s2 + $0x38] sm:$0xff]  ;;  %v125_v27 = vld [vmem:[%s1172_s2 + $0x30] sm:$0xff]  ;;  %vm114_vm2 = vcmask 785408   ;;  %vm246_vm3 = vcmask 254976  }
   0xe   :  { %719 = vmatprep.subr.mxu0 %v130_v22  ;;  %v124_v28 = vld [vmem:[%s1172_s2 + $0x28] sm:$0xff]  ;;  %v123_v29 = vld [vmem:[%s1172_s2 + $0x20] sm:$0xff]  ;;  %v122_v30 = vld [vmem:[%s1172_s2 + $0x18] sm:$0xff] }
   0xf   :  { %720 = vmatpush3.msra.mxu0 %v130_v22  ;;  %v121_v31 = vld [vmem:[%s1172_s2 + $0x10] sm:$0xff]  ;;  %v120_v32 = vld [vmem:[%s1172_s2 + $0x8] sm:$0xff]  ;;  %v119_v33 = vld [vmem:[%s1172_s2] sm:$0xff] }
  0x10   :  { %721 = vmatprep.subr.mxu0 %v129_v23  ;;  %v40_v38 = vld [vmem:[%s1170_s0] sm:$0xff]  ;;  %v41_v39 = vld [vmem:[%s1170_s0 + $0x8] sm:$0xff]  ;;  %v42_v46 = vld [vmem:[%s1170_s0 + $0x10] sm:$0xff] }
  0x11   :  { %722 = vmatpush3.msra.mxu0 %v129_v23  ;;  %v43_v47 = vld [vmem:[%s1170_s0 + $0x18] sm:$0x3]  ;;  %v659_v6 = vld [vmem:[%s1173_s3] ss:$0 sm:$0xff] }
  0x12   :  { %723 = vmatprep.subr.mxu0 %v128_v24 }
  0x13   :  { %724 = vmatpush3.msra.mxu0 %v128_v24 }
  0x14   :  { %725 = vmatprep.subr.mxu0 %v127_v25 }
  0x15   :  { %726 = vmatpush3.msra.mxu0 %v127_v25 }
  0x16   :  { %727 = vmatprep.subr.mxu0 %v126_v26 }
  0x17   :  { %728 = vmatpush3.msra.mxu0 %v126_v26 }
  0x18   :  { %729 = vmatprep.subr.mxu0 %v125_v27 }
  0x19   :  { %730 = vmatpush3.msra.mxu0 %v125_v27 }
  0x1a   :  { %731 = vmatprep.subr.mxu0 %v124_v28 }
  0x1b   :  { %732 = vmatpush3.msra.mxu0 %v124_v28 }
  0x1c   :  { %733 = vmatprep.subr.mxu0 %v123_v29 }
  0x1d   :  { %734 = vmatpush3.msra.mxu0 %v123_v29 }
  0x1e   :  { %735 = vmatprep.subr.mxu0 %v122_v30 }
  0x1f   :  { %736 = vmatpush3.msra.mxu0 %v122_v30 }
  0x20   :  { %737 = vmatprep.subr.mxu0 %v121_v31 }
  0x21   :  { %738 = vmatpush3.msra.mxu0 %v121_v31 }
  0x22   :  { %739 = vmatprep.subr.mxu0 %v120_v32 }
  0x23   :  { %740 = vmatpush3.msra.mxu0 %v120_v32 }
  0x24   :  { %741 = vmatprep.subr.mxu0 %v119_v33 }
  0x25   :  { %742 = vmatpush3.msra.mxu0 %v119_v33 }
  0x76   :  { %v785_v34 = vpop.permute.xlu0 %784 }
  0x77   :  { %v795_v35 = vpop.permute.xlu1 %794  ;;  %v787_v36 = vunpack.i.h.bf16 %v785_v34  ;;  %v786_v37 = vunpack.i.l.bf16 %v785_v34  ;;  %v325_v34 = vld [vmem:[%s1176_s6 + $0x10] sm:$0xff] }
  0x78   :  { %v797_v40 = vunpack.i.h.bf16 %v795_v35  ;;  %v796_v41 = vunpack.i.l.bf16 %v795_v35  ;;  %v324_v35 = vld [vmem:[%s1176_s6 + $0x8] sm:$0xff] }
  0x79   :  { %v105_v50 = vsel %vm104_vm0, %v40_v38, %v786_v37  ;;  %v106_v51 = vsel %vm104_vm0, %v41_v39, %v787_v36  ;;  %v323_v36 = vld [vmem:[%s1176_s6] sm:$0xff]  ;;  %v438_v37 = vld [vmem:[%s1178_s8 + $0x18] sm:$0xff] }
  0x7a   :  { %v790_v42 = vpop.permute.xlu0 %789 }
  0x7b   :  { %v792_v43 = vunpack.i.h.bf16 %v790_v42  ;;  %v791_v44 = vunpack.i.l.bf16 %v790_v42  ;;  %v800_v45 = vpop.permute.xlu1 %799 }
  0x7c   :  { %v802_v48 = vunpack.i.h.bf16 %v800_v45  ;;  %v801_v49 = vunpack.i.l.bf16 %v800_v45 }
  0x7d   :  { %v110_v52 = vsel %vm109_vm1, %v105_v50, %v791_v44  ;;  %v111_v53 = vsel %vm109_vm1, %v106_v51, %v792_v43 }
  0x7e   :  { %v805_v54 = vpop.permute.xlu0 %804  ;;  %v115_v55 = vsel %vm114_vm2, %v110_v52, %v796_v41  ;;  %v116_v56 = vsel %vm114_vm2, %v111_v53, %v797_v40  ;;  %v107_v57 = vsel %vm104_vm0, %v42_v46, %v801_v49  ;;  %v108_v58 = vsel %vm104_vm0, %v43_v47, %v802_v48 }
  0x7f   :  { %v807_v59 = vunpack.i.h.bf16 %v805_v54  ;;  %v806_v60 = vunpack.i.l.bf16 %v805_v54  ;;  %v810_v61 = vpop.permute.xlu1 %809  ;;  %743 = vmatprep.mubr.f32.mxu0 %v115_v55 }
  0x80   :  { %v812_v62 = vunpack.i.h.bf16 %v810_v61  ;;  %v811_v63 = vunpack.i.l.bf16 %v810_v61  ;;  %744 = vmatmul.mubr.f32.vlgmr.msra.gmra.mxu0 %v116_v56 }
  0x81   :  { %v112_v0 = vsel %vm109_vm1, %v107_v57, %v806_v60  ;;  %v113_v1 = vsel %vm109_vm1, %v108_v58, %v807_v59 }
  0x82   :  { %v117_v3 = vsel %vm114_vm2, %v112_v0, %v811_v63  ;;  %v118_v5 = vsel %vm114_vm2, %v113_v1, %v812_v62 }
  0x83   :  { %746 = vmatprep.mubr.f32.mxu0 %v117_v3 }
  0x84   :  { %747 = vmatmul.mubr.f32.gmra.mxu0 %v118_v5 }
 0x140   :  { %v745_v7 = vpop.f32.mrf.mxu0 }
 0x141   :  { %v214_v8 = vadd.f32 %v745_v7, %v659_v6 }
 0x142   :  { %v208_v9 = vpop.f32.mrf.mxu0 }
 0x143   :  { %v228_v10 = vmax.f32 %v214_v8, 0.0  ;;  %v209_v11 = vadd.f32 %v659_v6, %v208_v9 }
 0x144   :  { %v748_v12 = vpop.f32.mrf.mxu0 }
 0x145   :  { %v1046_v13 = vadd.f32 %v228_v10, %v936_v4  ;;  %v227_v14 = vmax.f32 %v209_v11, 0.0  ;;  %v224_v21 = vadd.f32 %v748_v12, %v659_v6 }
 0x146   :  { %v218_v15 = vpop.f32.mrf.mxu0 }
 0x147   :  { %v1049_v18 = vadd.f32 %v227_v14, %v931_v2  ;;  %v219_v19 = vadd.f32 %v659_v6, %v218_v15  ;;  %v240_v20 = vsel %vm104_vm0, %v1046_v13, 0.0  ;;  %v256_v24 = vmul.f32 %v1046_v13, %v1046_v13  ;;  %v660_v15 = vld [vmem:[%s1174_s4] ss:$0 sm:$0xff] }
 0x148   :  { %241 = vadd.xlane.f32.xlu1 %v240_v20  ;;  %v230_v25 = vmax.f32 %v224_v21, 0.0 }
 0x149   :  { %v229_v22 = vmax.f32 %v219_v19, 0.0  ;;  %v237_v23 = vsel %vm104_vm0, %v1049_v18, 0.0  ;;  %v262_v26 = vsel %vm104_vm0, %v256_v24, 0.0  ;;  %v255_v28 = vmul.f32 %v1049_v18, %v1049_v18 }
 0x14a   :  { %238 = vadd.xlane.f32.xlu0 %v237_v23  ;;  %v1069_v30 = vadd.f32 %v230_v25, %v972_v17  ;;  %v326_v17 = vld [vmem:[%s1176_s6 + $0x18] sm:$0xff]  ;;  %v661_v23 = vld [vmem:[%s1175_s5] ss:$0 sm:$0xff] }
 0x14b   :  { %v1058_v4 = vadd.f32 %v229_v22, %v967_v16  ;;  %v259_v16 = vsel %vm104_vm0, %v255_v28, 0.0  ;;  %749 = vmatprep.subr.mxu1 %v326_v17 }
 0x14c   :  { %v247_v31 = vsel %vm246_vm3, %v1069_v30, 0.0  ;;  %v258_v32 = vmul.f32 %v1069_v30, %v1069_v30  ;;  %750 = vmatpush3.msra.mxu1 %v326_v17 }
 0x14d   :  { %v243_v2 = vsel %vm104_vm0, %v1058_v4, 0.0  ;;  %v257_v27 = vmul.f32 %v1058_v4, %v1058_v4  ;;  %751 = vmatprep.subr.mxu1 %v325_v34 }
 0x14e   :  { %244 = vadd.xlane.f32.xlu1 %v243_v2  ;;  %263 = vadd.xlane.f32.xlu0 %v262_v26  ;;  %v268_v33 = vsel %vm246_vm3, %v258_v32, 0.0  ;;  %v662_v32 = vld [vmem:[%s1177_s7] ss:$0 sm:$0xff] }
 0x14f   :  { %v265_v29 = vsel %vm104_vm0, %v257_v27, 0.0  ;;  %752 = vmatpush3.msra.mxu1 %v325_v34 }
 0x150   :  { %753 = vmatprep.subr.mxu1 %v324_v35 }
 0x151   :  { %754 = vmatpush3.msra.mxu1 %v324_v35 }
 0x152   :  { %266 = vadd.xlane.f32.xlu1 %v265_v29  ;;  %260 = vadd.xlane.f32.xlu0 %v259_v16  ;;  %v437_v16 = vld [vmem:[%s1178_s8 + $0x10] sm:$0xff] }
 0x153   :  { %755 = vmatprep.subr.mxu1 %v323_v36 }
 0x154   :  { %756 = vmatpush3.msra.mxu1 %v323_v36 }
 0x155   :  { %763 = vmatprep.subr.mxu1 %v438_v37 }
 0x156   :  { %248 = vadd.xlane.f32.xlu0 %v247_v31  ;;  %v435_v31 = vld [vmem:[%s1178_s8] sm:$0xff] }
 0x15a   :  { %269 = vadd.xlane.f32.xlu0 %v268_v33 }
 0x1d1   :  { %v242_v38 = vpop.xlane.xlu1 %241 }
 0x1d2   :  { %v252_v40 = vmul.f32 0.03125, %v242_v38 }
 0x1d3   :  { %v239_v39 = vpop.xlane.xlu0 %238 }
 0x1d4   :  { %v276_v43 = vmul.f32 %v252_v40, %v252_v40  ;;  %v251_v44 = vmul.f32 0.03125, %v239_v39  ;;  %v288_v9 = vsub.f32 %v1046_v13, %v252_v40 }
 0x1d6   :  { %v275_v51 = vmul.f32 %v251_v44, %v251_v44  ;;  %v287_v14 = vsub.f32 %v1049_v18, %v251_v44  ;;  %v667_v44 = vld [vmem:[%s1179_s9] ss:$0 sm:$0xff] }
 0x1d7   :  { %v245_v41 = vpop.xlane.xlu1 %244  ;;  %v264_v42 = vpop.xlane.xlu0 %263 }
 0x1d8   :  { %v253_v45 = vmul.f32 0.03125, %v245_v41  ;;  %v272_v46 = vmul.f32 0.03125, %v264_v42 }
 0x1da   :  { %v277_v47 = vmul.f32 %v253_v45, %v253_v45  ;;  %v280_v48 = vsub.f32 %v272_v46, %v276_v43  ;;  %v289_v10 = vsub.f32 %v1058_v4, %v253_v45 }
 0x1db   :  { %v267_v49 = vpop.xlane.xlu1 %266  ;;  %v261_v50 = vpop.xlane.xlu0 %260 }
 0x1dc   :  { %v284_v52 = vmax.f32 %v280_v48, 0.0  ;;  %v273_v53 = vmul.f32 0.03125, %v267_v49  ;;  %v271_v54 = vmul.f32 0.03125, %v261_v50 }
 0x1de   :  { %v292_v55 = vadd.f32 1e-05, %v284_v52  ;;  %v281_v56 = vsub.f32 %v273_v53, %v277_v47  ;;  %v279_v57 = vsub.f32 %v271_v54, %v275_v51 }
 0x1df   :  { %v249_v58 = vpop.xlane.xlu0 %248 }
 0x1e0   :  { %813 = vrsqrt.f32 %v292_v55  ;;  %v285_v59 = vmax.f32 %v281_v56, 0.0  ;;  %v283_v60 = vmax.f32 %v279_v57, 0.0  ;;  %v254_v61 = vmul.f32 0.03125, %v249_v58 }
 0x1e2   :  { %v293_v62 = vadd.f32 1e-05, %v285_v59  ;;  %v291_v63 = vadd.f32 1e-05, %v283_v60  ;;  %v278_v1 = vmul.f32 %v254_v61, %v254_v61  ;;  %v290_v4 = vsub.f32 %v1069_v30, %v254_v61  ;;  %v436_v30 = vld [vmem:[%s1178_s8 + $0x8] sm:$0xff] }
 0x1e3   :  { %v270_v0 = vpop.xlane.xlu0 %269 }
 0x1e4   :  { %815 = vrsqrt.f32 %v293_v62  ;;  %v274_v3 = vmul.f32 0.03125, %v270_v0 }
 0x1e5   :  { %817 = vrsqrt.f32 %v291_v63 }
 0x1e6   :  { %v282_v5 = vsub.f32 %v274_v3, %v278_v1 }
 0x1e8   :  { %v286_v6 = vmax.f32 %v282_v5, 0.0 }
 0x1ea   :  { %v294_v7 = vadd.f32 1e-05, %v286_v6 }
 0x1ec   :  { %819 = vrsqrt.f32 %v294_v7 }
 0x1ed   :  { %v814_v8 = vpop.eup %813 }
 0x1ee   :  { %v300_v11 = vmul.f32 %v814_v8, %v288_v9 }
 0x1f0   :  { %v310_v22 = vmul.f32 %v660_v15, %v300_v11 }
 0x1f1   :  { %v816_v12 = vpop.eup %815 }
 0x1f2   :  { %v818_v19 = vpop.eup %817  ;;  %v301_v20 = vmul.f32 %v816_v12, %v289_v10  ;;  %v320_v2 = vadd.f32 %v661_v23, %v310_v22 }
 0x1f3   :  { %v299_v21 = vmul.f32 %v818_v19, %v287_v14 }
 0x1f4   :  { %v311_v13 = vmul.f32 %v660_v15, %v301_v20 }
 0x1f5   :  { %v309_v24 = vmul.f32 %v660_v15, %v299_v21 }
 0x1f6   :  { %v321_v18 = vadd.f32 %v661_v23, %v311_v13 }
 0x1f7   :  { %v319_v25 = vadd.f32 %v661_v23, %v309_v24 }
 0x1f9   :  { %v820_v26 = vpop.eup %819  ;;  %757 = vmatprep.mubr.msk.f32.mxu1 %vm104_vm0, %v319_v25 }
 0x1fa   :  { %758 = vmatmul.mubr.msk.f32.vlgmr.msra.gmra.mxu1 %vm104_vm0, %v320_v2  ;;  %v302_v27 = vmul.f32 %v820_v26, %v290_v4 }
 0x1fb   :  { %760 = vmatprep.mubr.msk.f32.mxu1 %vm104_vm0, %v321_v18  ;;  %764 = vmatpush3.msra.mxu1 %v438_v37 }
 0x1fc   :  { %v312_v28 = vmul.f32 %v660_v15, %v302_v27  ;;  %765 = vmatprep.subr.mxu1 %v437_v16 }
 0x1fd   :  { %766 = vmatpush3.msra.mxu1 %v437_v16 }
 0x1fe   :  { %v322_v29 = vadd.f32 %v661_v23, %v312_v28  ;;  %767 = vmatprep.subr.mxu1 %v436_v30 }
 0x1ff   :  { %768 = vmatpush3.msra.mxu1 %v436_v30 }
 0x200   :  { %761 = vmatmul.mubr.msk.f32.gmra.mxu1 %vm104_vm0, %v322_v29  ;;  %769 = vmatprep.subr.mxu1 %v435_v31 }
 0x201   :  { %770 = vmatpush3.msra.mxu1 %v435_v31 }
 0x2ba   :  { %v759_v33 = vpop.f32.mrf.mxu1 }
 0x2bb   :  { %v418_v17 = vadd.f32 %v759_v33, %v662_v32 }
 0x2bc   :  { %v412_v34 = vpop.f32.mrf.mxu1 }
 0x2bd   :  { %v413_v35 = vadd.f32 %v662_v32, %v412_v34  ;;  %v432_v37 = vmax.f32 %v418_v17, 0.0 }
 0x2bf   :  { %v431_v36 = vmax.f32 %v413_v35, 0.0 }
 0x2c0   :  { %v762_v38 = vpop.f32.mrf.mxu1 }
 0x2c1   :  { %771 = vmatprep.mubr.msk.f32.mxu1 %vm104_vm0, %v431_v36  ;;  %v428_v39 = vadd.f32 %v762_v38, %v662_v32 }
 0x2c2   :  { %772 = vmatmul.mubr.msk.f32.vlgmr.msra.gmra.mxu1 %vm104_vm0, %v432_v37  ;;  %v422_v40 = vpop.f32.mrf.mxu1 }
 0x2c3   :  { %v423_v41 = vadd.f32 %v662_v32, %v422_v40  ;;  %v434_v43 = vmax.f32 %v428_v39, 0.0  ;;  %v672_v39 = vld [vmem:[%s1180_s10] ss:$0 sm:$0xff]  ;;  %s854_s10 = smov [#allocation4]  }
 0x2c5   :  { %v433_v42 = vmax.f32 %v423_v41, 0.0 }
 0x2c7   :  { %774 = vmatprep.mubr.msk.f32.mxu1 %vm104_vm0, %v433_v42 }
 0x2c8   :  { %775 = vmatmul.mubr.msk.f32.gmra.mxu1 %vm104_vm0, %v434_v43  ;;  %v673_v43 = vld [vmem:[%s1181_s11] ss:$0 sm:$0xff]  ;;  %s642_s11 = sshll.u32 %s854_s10, 4  ;;  %s643_s11 = int_to_ptr.vmem [resolvable:$true] %s642_s11 }
 0x2c9   :  { %s829_s3 = scalar_lea.vmem %s643_s11, 512  ;;  %p834_p1 = scmp.lt.s32.totalorder %s643_s11, %s643_s11 }
 0x2ca   :  { %p830_p0 = scmp.ne.s32.totalorder %s643_s11, %s829_s3  ;;  %p835_p2 = scmp.lt.s32.totalorder %s829_s3, %s829_s3 }
 0x2cc   :  { %p836_p3 = por %p835_p2, %p834_p1 }
 0x2ce   :  { %p837_p4 = pnand %p836_p3, %p830_p0 }
 0x382   :  { %v773_v45 = vpop.f32.mrf.mxu1 }
 0x383   :  { %v530_v46 = vadd.f32 %v773_v45, %v667_v44 }
 0x384   :  { %v524_v47 = vpop.f32.mrf.mxu1 }
 0x385   :  { %v1125_v48 = vadd.f32 %v530_v46, %v320_v2  ;;  %v525_v49 = vadd.f32 %v667_v44, %v524_v47 }
 0x387   :  { %v1127_v50 = vadd.f32 %v525_v49, %v319_v25  ;;  %v552_v51 = vsel %vm104_vm0, %v1125_v48, 0.0  ;;  %v566_v52 = vmul.f32 %v1125_v48, %v1125_v48 }
 0x388   :  { %553 = vadd.xlane.f32.xlu0 %v552_v51  ;;  %v776_v53 = vpop.f32.mrf.mxu1 }
 0x389   :  { %v540_v54 = vadd.f32 %v776_v53, %v667_v44  ;;  %v549_v55 = vsel %vm104_vm0, %v1127_v50, 0.0  ;;  %v565_v56 = vmul.f32 %v1127_v50, %v1127_v50  ;;  %v572_v60 = vsel %vm104_vm0, %v566_v52, 0.0 }
 0x38a   :  { %550 = vadd.xlane.f32.xlu1 %v549_v55  ;;  %v534_v57 = vpop.f32.mrf.mxu1 }
 0x38b   :  { %v1137_v58 = vadd.f32 %v540_v54, %v322_v29  ;;  %v535_v59 = vadd.f32 %v667_v44, %v534_v57  ;;  %v569_v62 = vsel %vm104_vm0, %v565_v56, 0.0 }
 0x38c   :  { %573 = vadd.xlane.f32.xlu0 %v572_v60 }
 0x38d   :  { %v1140_v61 = vadd.f32 %v535_v59, %v321_v18  ;;  %v558_v63 = vsel %vm246_vm3, %v1137_v58, 0.0  ;;  %v568_v1 = vmul.f32 %v1137_v58, %v1137_v58 }
 0x38e   :  { %570 = vadd.xlane.f32.xlu1 %v569_v62 }
 0x38f   :  { %v555_v0 = vsel %vm104_vm0, %v1140_v61, 0.0  ;;  %v567_v3 = vmul.f32 %v1140_v61, %v1140_v61  ;;  %v578_v5 = vsel %vm246_vm3, %v568_v1, 0.0 }
 0x390   :  { %559 = vadd.xlane.f32.xlu0 %v558_v63 }
 0x391   :  { %v575_v6 = vsel %vm104_vm0, %v567_v3, 0.0 }
 0x392   :  { %556 = vadd.xlane.f32.xlu1 %v555_v0 }
 0x394   :  { %579 = vadd.xlane.f32.xlu0 %v578_v5 }
 0x396   :  { %576 = vadd.xlane.f32.xlu1 %v575_v6 }
 0x411   :  { %v554_v7 = vpop.xlane.xlu0 %553 }
 0x412   :  { %v562_v8 = vmul.f32 0.03125, %v554_v7 }
 0x413   :  { %v551_v9 = vpop.xlane.xlu1 %550 }
 0x414   :  { %v561_v10 = vmul.f32 0.03125, %v551_v9  ;;  %v586_v12 = vmul.f32 %v562_v8, %v562_v8  ;;  %v598_v37 = vsub.f32 %v1125_v48, %v562_v8 }
 0x415   :  { %v574_v11 = vpop.xlane.xlu0 %573 }
 0x416   :  { %v582_v14 = vmul.f32 0.03125, %v574_v11  ;;  %v585_v19 = vmul.f32 %v561_v10, %v561_v10  ;;  %v597_v40 = vsub.f32 %v1127_v50, %v561_v10 }
 0x417   :  { %v571_v15 = vpop.xlane.xlu1 %570 }
 0x418   :  { %v590_v20 = vsub.f32 %v582_v14, %v586_v12  ;;  %v581_v21 = vmul.f32 0.03125, %v571_v15 }
 0x419   :  { %v560_v22 = vpop.xlane.xlu0 %559 }
 0x41a   :  { %v594_v23 = vmax.f32 %v590_v20, 0.0  ;;  %v589_v24 = vsub.f32 %v581_v21, %v585_v19  ;;  %v564_v13 = vmul.f32 0.03125, %v560_v22 }
 0x41b   :  { %v557_v25 = vpop.xlane.xlu1 %556 }
 0x41c   :  { %v602_v4 = vadd.f32 1e-05, %v594_v23  ;;  %v593_v2 = vmax.f32 %v589_v24, 0.0  ;;  %v563_v26 = vmul.f32 0.03125, %v557_v25  ;;  %v588_v28 = vmul.f32 %v564_v13, %v564_v13 }
 0x41d   :  { %v580_v18 = vpop.xlane.xlu0 %579  ;;  %v600_v49 = vsub.f32 %v1137_v58, %v564_v13 }
 0x41e   :  { %821 = vrsqrt.f32 %v602_v4  ;;  %v601_v27 = vadd.f32 1e-05, %v593_v2  ;;  %v584_v29 = vmul.f32 0.03125, %v580_v18  ;;  %v587_v30 = vmul.f32 %v563_v26, %v563_v26 }
 0x41f   :  { %v577_v16 = vpop.xlane.xlu1 %576  ;;  %v599_v52 = vsub.f32 %v1140_v61, %v563_v26 }
 0x420   :  { %823 = vrsqrt.f32 %v601_v27  ;;  %v592_v31 = vsub.f32 %v584_v29, %v588_v28  ;;  %v583_v32 = vmul.f32 0.03125, %v577_v16 }
 0x422   :  { %v596_v33 = vmax.f32 %v592_v31, 0.0  ;;  %v591_v17 = vsub.f32 %v583_v32, %v587_v30 }
 0x424   :  { %v604_v34 = vadd.f32 1e-05, %v596_v33  ;;  %v595_v35 = vmax.f32 %v591_v17, 0.0 }
 0x426   :  { %825 = vrsqrt.f32 %v604_v34  ;;  %v603_v36 = vadd.f32 1e-05, %v595_v35 }
 0x428   :  { %827 = vrsqrt.f32 %v603_v36 }
 0x42b   :  { %v822_v38 = vpop.eup %821 }
 0x42c   :  { %v610_v41 = vmul.f32 %v822_v38, %v598_v37 }
 0x42d   :  { %v824_v42 = vpop.eup %823 }
 0x42e   :  { %v609_v44 = vmul.f32 %v824_v42, %v597_v40  ;;  %v620_v45 = vmul.f32 %v672_v39, %v610_v41 }
 0x430   :  { %v619_v46 = vmul.f32 %v672_v39, %v609_v44  ;;  %v630_v47 = vadd.f32 %v673_v43, %v620_v45 }
 0x432   :  { %v629_v48 = vadd.f32 %v673_v43, %v619_v46  ;;  %634 = vst.msk [vmem:[#allocation4 + $0x8] sm:$0xff] %vm104_vm0, %v630_v47 }
 0x433   :  { %v826_v51 = vpop.eup %825 }
 0x434   :  { %v612_v53 = vmul.f32 %v826_v51, %v600_v49  ;;  %633 = vst.msk [vmem:[#allocation4] sm:$0xff] %vm104_vm0, %v629_v48 }
 0x435   :  { %v828_v50 = vpop.eup %827 }
 0x436   :  { %v622_v54 = vmul.f32 %v672_v39, %v612_v53  ;;  %v611_v55 = vmul.f32 %v828_v50, %v599_v52 }
 0x438   :  { %v621_v56 = vmul.f32 %v672_v39, %v611_v55  ;;  %v632_v57 = vadd.f32 %v673_v43, %v622_v54 }
 0x43a   :  { %v631_v59 = vadd.f32 %v673_v43, %v621_v56  ;;  %636 = vst.msk [vmem:[#allocation4 + $0x18] sm:$0x3] %vm246_vm3, %v632_v57 }
 0x43c   :  { %635 = vst.msk [vmem:[#allocation4 + $0x10] sm:$0xff] %vm104_vm0, %v631_v59 }
 0x43d   :  { %840 = shalt.err (!%p837_p4)
}
 0x43e   :  { %s855_s1 = smov 128   ;;  %s856_s30 = smov 8  }
 0x43f   :  { %648 = dma.vmem_to_hbm [thread:$0]  %s643_s11, 512, %s1182_s12, [#allocation5], %s855_s1, %s855_s1, %s856_s30  }
 0x440   :  { %849 = dma.done.wait [#allocation5], 512  }
 0x441   :  { %850 = vsyncadd [#allocation5], 4294966784 }
 0x442   :  { %652 = vsyncpa [#allocation5], 1 }
 0x443   :  { %653 = vsyncmov [#allocation3] }
 0x446   :  { %s654_s15 = vpop.sfrf %653 }
 0x447   :  { %p674_p5 = scmp.ne.s32.totalorder %s654_s15, 0 }
 0x449   :  { %658 = shalt.err (%p674_p5)  }

</bundles_post_ra>
